<compile_context>
chip_gen: v5e
topology: v5e:2x2
jax: 0.10.0
libtpu: 0.0.40
codegen_flags: <defaults>
</compile_context>

<pallas_src>
import jax
import jax.numpy as jnp
from jax.experimental import pallas as pl
from jax.experimental.pallas import tpu as pltpu

STATE_DIM = 8
HIDDEN = 128
ACTION_N = 4


def deep_cem_kernel(x_ref, w1_ref, b1_ref, w2_ref, b2_ref, o_ref):
    # x_ref:  [STATE_DIM, TB]           (batch on lanes)
    # w1_ref: [HIDDEN, STATE_DIM]       b1_ref: [HIDDEN, 1]
    # w2_ref: [ACTION_N, HIDDEN]        b2_ref: [ACTION_N, 1]
    # o_ref:  [ACTION_N, TB]            (lane-dense output)
    h = jnp.dot(w1_ref[...], x_ref[...], preferred_element_type=jnp.float32)
    h = jnp.maximum(h + b1_ref[...], 0.0)  # bias (column broadcast) + ReLU in f32
    logits = jnp.dot(w2_ref[...], h, preferred_element_type=jnp.float32) + b2_ref[...]
    o_ref[...] = logits.astype(o_ref.dtype)


def deep_cem_forward(x, w1, b1, w2, b2, *, tb=512):
    """Fused MLP forward matching PyTorch: relu(x @ w1.T + b1) @ w2.T + b2.

    x:  [B, STATE_DIM] float32
    w1: [HIDDEN, STATE_DIM], b1: [HIDDEN]      (nn.Linear layout: [out, in])
    w2: [ACTION_N, HIDDEN],  b2: [ACTION_N]
    returns [B, ACTION_N] float32 logits.
    """
    B = x.shape[0]

    # Batch tile size: one full block for small B, otherwise a lane-aligned
    # tile (tb is a multiple of 128); Pallas pads/masks any ragged tail block.
    tb_eff = B if B <= tb else tb
    grid = (pl.cdiv(B, tb_eff),)

    xT = x.T                                  # [STATE_DIM, B] (batch on lanes)
    b1_col = b1.reshape(HIDDEN, 1)
    b2_col = b2.reshape(ACTION_N, 1)

    outT = pl.pallas_call(
        deep_cem_kernel,
        out_shape=jax.ShapeDtypeStruct((ACTION_N, B), jnp.float32),
        grid_spec=pl.GridSpec(
            grid=grid,
            in_specs=[
                pl.BlockSpec((STATE_DIM, tb_eff), lambda i: (0, i)),   # x tile, pipelined
                pl.BlockSpec((HIDDEN, STATE_DIM), lambda i: (0, 0)),   # W1, VMEM-resident
                pl.BlockSpec((HIDDEN, 1), lambda i: (0, 0)),           # b1
                pl.BlockSpec((ACTION_N, HIDDEN), lambda i: (0, 0)),    # W2
                pl.BlockSpec((ACTION_N, 1), lambda i: (0, 0)),         # b2
            ],
            out_specs=pl.BlockSpec((ACTION_N, tb_eff), lambda i: (0, i)),
        ),
        compiler_params=pltpu.CompilerParams(
            # Batch tiles are independent -> shard across TCs on v7x megacore.
            dimension_semantics=("parallel",),
        ),
    )(xT, w1, b1_col, w2, b2_col)

    return outT.T                              # [B, ACTION_N]


def init_params(key):
    """Deterministic PyTorch nn.Linear-style uniform init, native [out, in] layout."""
    k1, k2, k3, k4 = jax.random.split(key, 4)
    bound1 = 1.0 / jnp.sqrt(STATE_DIM)
    bound2 = 1.0 / jnp.sqrt(HIDDEN)
    w1 = jax.random.uniform(k1, (HIDDEN, STATE_DIM), jnp.float32, -bound1, bound1)
    b1 = jax.random.uniform(k2, (HIDDEN,), jnp.float32, -bound1, bound1)
    w2 = jax.random.uniform(k3, (ACTION_N, HIDDEN), jnp.float32, -bound2, bound2)
    b2 = jax.random.uniform(k4, (ACTION_N,), jnp.float32, -bound2, bound2)
    return w1, b1, w2, b2


if __name__ == "__main__":
    key = jax.random.PRNGKey(0)
    pkey, xkey = jax.random.split(key)

    w1, b1, w2, b2 = init_params(pkey)

    # Batch of LunarLander-v2 states (state_dim = 8). Use tb=128 so the demo
    # exercises a multi-step, pipelined grid (grid=(2,)).
    batch = 256
    x = jax.random.normal(xkey, (batch, STATE_DIM), jnp.float32)

    logits = deep_cem_forward(x, w1, b1, w2, b2, tb=128)
    logits = jax.block_until_ready(logits)

    # Reference check in plain JAX (PyTorch nn.Linear semantics: y = x W^T + b).
    ref = jnp.maximum(x @ w1.T + b1, 0.0) @ w2.T + b2
    assert logits.shape == (batch, ACTION_N)
    assert jnp.allclose(logits, ref, atol=1e-5, rtol=1e-5)

    # NOTE: softmax + np.random.choice in get_action is host-side sampling glue,
    # not part of forward(); the kernel reproduces forward() (logits) exactly.
    print("KERNEL_OK")
</pallas_src>

<mosaic_0001>
module attributes {stable_mosaic.version = 11 : i64} {
  func.func @deep_cem_kernel(%arg0: i32, %arg1: memref<8x128xf32, #tpu.memory_space<vmem>>, %arg2: memref<128x8xf32, #tpu.memory_space<vmem>>, %arg3: memref<128x1xf32, #tpu.memory_space<vmem>>, %arg4: memref<4x128xf32, #tpu.memory_space<vmem>>, %arg5: memref<4x1xf32, #tpu.memory_space<vmem>>, %arg6: memref<4x128xf32, #tpu.memory_space<vmem>>) attributes {dimension_semantics = [#tpu.dimension_semantics<parallel>], iteration_bounds = array<i64: 2>, scalar_prefetch = 0 : i64, scratch_operands = 0 : i64, tpu.core_type = #tpu.core_type<tc>, window_params = [{transform_indices = @transform_0, window_bounds = array<i64: 8, 128>}, {pipeline_mode = #tpu.pipeline_mode<synchronous>, transform_indices = @transform_1, window_bounds = array<i64: 128, 8>}, {pipeline_mode = #tpu.pipeline_mode<synchronous>, transform_indices = @transform_2, window_bounds = array<i64: 128, 1>}, {pipeline_mode = #tpu.pipeline_mode<synchronous>, transform_indices = @transform_3, window_bounds = array<i64: 4, 128>}, {pipeline_mode = #tpu.pipeline_mode<synchronous>, transform_indices = @transform_4, window_bounds = array<i64: 4, 1>}, {transform_indices = @transform_5, window_bounds = array<i64: 4, 128>}]} {
    %c0 = arith.constant 0 : index
    %c0_0 = arith.constant 0 : index
    %0 = vector.load %arg2[%c0, %c0_0] : memref<128x8xf32, #tpu.memory_space<vmem>>, vector<128x8xf32>
    %c0_1 = arith.constant 0 : index
    %c0_2 = arith.constant 0 : index
    %1 = vector.load %arg1[%c0_1, %c0_2] : memref<8x128xf32, #tpu.memory_space<vmem>>, vector<8x128xf32>
    %cst = arith.constant dense<0.000000e+00> : vector<128x128xf32>
    %2 = tpu.matmul %0, %1, %cst {dimension_numbers = #tpu.dot_dimension_numbers<[1], [0], [0], [1], [0, 0, 1, 1], [], []>} : vector<128x8xf32>, vector<8x128xf32>, vector<128x128xf32> -> vector<128x128xf32>
    %c0_3 = arith.constant 0 : index
    %c0_4 = arith.constant 0 : index
    %3 = vector.load %arg3[%c0_3, %c0_4] : memref<128x1xf32, #tpu.memory_space<vmem>>, vector<128x1xf32>
    %4 = vector.broadcast %3 : vector<128x1xf32> to vector<128x128xf32>
    %5 = arith.addf %2, %4 : vector<128x128xf32>
    %cst_5 = arith.constant 0.000000e+00 : f32
    %6 = vector.broadcast %cst_5 : f32 to vector<128x128xf32>
    %7 = arith.maximumf %5, %6 : vector<128x128xf32>
    %c0_6 = arith.constant 0 : index
    %c0_7 = arith.constant 0 : index
    %8 = vector.load %arg4[%c0_6, %c0_7] : memref<4x128xf32, #tpu.memory_space<vmem>>, vector<4x128xf32>
    %cst_8 = arith.constant dense<0.000000e+00> : vector<4x128xf32>
    %9 = tpu.matmul %8, %7, %cst_8 {dimension_numbers = #tpu.dot_dimension_numbers<[1], [0], [0], [1], [0, 0, 1, 1], [], []>} : vector<4x128xf32>, vector<128x128xf32>, vector<4x128xf32> -> vector<4x128xf32>
    %c0_9 = arith.constant 0 : index
    %c0_10 = arith.constant 0 : index
    %10 = vector.load %arg5[%c0_9, %c0_10] : memref<4x1xf32, #tpu.memory_space<vmem>>, vector<4x1xf32>
    %11 = vector.broadcast %10 : vector<4x1xf32> to vector<4x128xf32>
    %12 = arith.addf %9, %11 : vector<4x128xf32>
    %c0_11 = arith.constant 0 : index
    %c0_12 = arith.constant 0 : index
    %13 = vector.load %arg6[%c0_11, %c0_12] : memref<4x128xf32, #tpu.memory_space<vmem>>, vector<4x128xf32>
    tpu.vector_store %arg6[%c0_11, %c0_12], %12 {strides = array<i32>} : memref<4x128xf32, #tpu.memory_space<vmem>>, vector<4x128xf32>,
    return
  }
  func.func @transform_0(%arg0: i32) -> (i32, i32) {
    %c0_i32 = arith.constant 0 : i32
    %c0_i32_0 = arith.constant 0 : i32
    return %c0_i32, %arg0 : i32, i32
  }
  func.func @transform_1(%arg0: i32) -> (i32, i32) {
    %c0_i32 = arith.constant 0 : i32
    %c0_i32_0 = arith.constant 0 : i32
    %c0_i32_1 = arith.constant 0 : i32
    return %c0_i32, %c0_i32_0 : i32, i32
  }
  func.func @transform_2(%arg0: i32) -> (i32, i32) {
    %c0_i32 = arith.constant 0 : i32
    %c0_i32_0 = arith.constant 0 : i32
    %c0_i32_1 = arith.constant 0 : i32
    return %c0_i32, %c0_i32_0 : i32, i32
  }
  func.func @transform_3(%arg0: i32) -> (i32, i32) {
    %c0_i32 = arith.constant 0 : i32
    %c0_i32_0 = arith.constant 0 : i32
    %c0_i32_1 = arith.constant 0 : i32
    return %c0_i32, %c0_i32_0 : i32, i32
  }
  func.func @transform_4(%arg0: i32) -> (i32, i32) {
    %c0_i32 = arith.constant 0 : i32
    %c0_i32_0 = arith.constant 0 : i32
    %c0_i32_1 = arith.constant 0 : i32
    return %c0_i32, %c0_i32_0 : i32, i32
  }
  func.func @transform_5(%arg0: i32) -> (i32, i32) {
    %c0_i32 = arith.constant 0 : i32
    %c0_i32_0 = arith.constant 0 : i32
    return %c0_i32, %arg0 : i32, i32
  }
}

</mosaic_0001>

<bundles_post_ra>
// kernel: tpu_custom_call.1
= control target key start
LH: loop header
LB: loop body
LE: loop exit
PB: predicated region body
PF: predicated region fallthrough
CT: control target
= control target key end

     0   :  { %10 = vsyncpa [#allocation3], 0  ;;  %s941_s0 = inlined_call_operand.vmem [shape: f32[8,256], index: 0, kind: input, shape index: {}]   ;;  %s942_s1 = inlined_call_operand.vmem [shape: f32[128,8], index: 1, kind: input, shape index: {}]   ;;  %s943_s2 = inlined_call_operand.vmem [shape: f32[128,1], index: 2, kind: input, shape index: {}]   ;;  %s944_s3 = inlined_call_operand.vmem [shape: f32[4,128], index: 3, kind: input, shape index: {}]   ;;  %s945_s4 = inlined_call_operand.vmem [shape: f32[4,1], index: 4, kind: input, shape index: {}]   ;;  %s946_s5 = inlined_call_operand.hbm [shape: f32[4,256], index: 5, kind: output, shape index: {}]  }
   0x1   :  { %12 = vsyncpa [#allocation3 + $0x1], 0  ;;  %s732_s18 = smov 0   ;;  %s734_s19 = smov 0  }
   0x2   :  { %s736_s20 = smov 0   ;;  %s738_s21 = smov 0  }
   0x3 LB: > { %s753_s22 = sadd.s32 4294967295, %s699_s21   ;;  %s566_s23 = sadd.s32 4294967294, %s699_s21   ;;  %s699_s21 = sphi %s738_s21, %s952_s21   ;;  %s695_s20 = sphi %s736_s20, %s951_s20   ;;  %s691_s19 = sphi %s734_s19, %s950_s19   ;;  %s687_s18 = sphi %s732_s18, %s949_s18  }
   0x4   : > { %s757_s24 = sadd.s32 1, %s699_s21   ;;  %s135_s25 = sadd.s32 1, %s695_s20 }
   0x5   : > { %s132_s26 = ssub.s32 %s699_s21, %s757_s24  ;;  %p145_p0 = scmp.ne.s32.totalorder %s695_s20, %s691_s19 }
   0x6   : > { %p133_p1 = scmp.eq.s32.totalorder %s132_s26, 0  ;;  %p146_p2 = scmp.eq.s32.totalorder %s753_s22, 1 }
   0x7   : > { %p151_p3 = scmp.ne.s32.totalorder %s691_s19, %s687_s18  ;;  %p152_p4 = scmp.eq.s32.totalorder %s566_s23, 1 }
   0x8   : > { %s768_s27 = scalar_select %p133_p1, %s695_s20, %s135_s25  }
   0x9   : > { %p770_p5 = por %p146_p2, %p145_p0  ;;  %p774_p6 = por %p152_p4, %p151_p3 }
   0xa   : > { %p569_p7 = scmp.ge.s32.totalorder %s699_s21, 1  ;;  %p189_p8 = scmp.lt.s32.totalorder %s699_s21, 3 }
   0xc   : > { %p190_p9 = pnand %p569_p7, %p189_p8 }
   0xd   : > { %p216_p10 = scmp.lt.s32.totalorder (!%p190_p9), %s753_s22, 1  ;;  %s213_s14 = sand.u32 (!%p190_p9), 1, %s691_s19  }
   0xe   : > { %193 = sbr.rel (%p190_p9) target bundleno = 356 (0x164), region = 40  ;;  %s570_s15 = sshll.u32 (!%p190_p9), %s213_s14, 2 }
   0xf   : > { %s589_s16 = sshll.u32 (!%p190_p9), %s753_s22, 2  ;;  %s215_s26 = scalar_lea.vmem (!%p190_p9), [#allocation2], %s570_s15 }
  0x10   : > { %s502_s25 = scalar_lea.hbm (!%p190_p9), %s946_s5, %s589_s16  ;;  %s504_s30 = sshll.u32 (!%p190_p9), %s215_s26, 4  ;;  %s505_s30 = int_to_ptr.vmem [resolvable:$true] %s504_s30 }
  0x11   : > { %s506_s6 = sshll.u32 (!%p190_p9), %s502_s25, 4  ;;  %s492_s7 = scalar_lea.sflag (!%p190_p9), [#allocation3], %s213_s14  ;;  %s507_s6 = int_to_ptr.hbm [resolvable:$true] %s506_s6 }
  0x12   : > { %s651_s8 = sshra.s32 (!%p190_p9), %s507_s6, 4  ;;  %s657_s11 = scalar_lea.hbm (!%p190_p9), %s946_s5, 8  ;;  %s652_s8 = int_to_ptr.hbm [resolvable:$true] %s651_s8 }
  0x13   : > { %v252_v0 = vld [vmem:[%s943_s2 + $0x78] sm:$0xff]  ;;  %v701_v1 = vmov 0   ;;  %v250_v2 = vld [vmem:[%s943_s2 + $0x68] sm:$0xff]  ;;  %s217_s9 = scalar_select %p216_p10, %s753_s22, 1  ;;  %v220_v3 = vld [vmem:[%s942_s1] sm:$0xff]  ;;  %vm333_vm0 = vcmask 64512  }
  0x14   : > { %634 = vset.pattern.permute.xlu0 %v701_v1  ;;  %635 = vset.pattern.permute.xlu1 %v701_v1  ;;  %v226_v5 = vld [vmem:[%s942_s1 + $0x30] sm:$0xff]  ;;  %v232_v6 = vld [vmem:[%s942_s1 + $0x60] sm:$0xff]  ;;  %v248_v9 = vld [vmem:[%s943_s2 + $0x58] sm:$0xff]  ;;  %p658_p0 = scmp.lt.s32.totalorder %s652_s8, %s946_s5 }
  0x15   : > { %330 = vperm.xlu0 %634, %v252_v0   ;;  %320 = vperm.xlu1 %635, %v250_v2   ;;  %s571_s10 = sshll.u32 %s217_s9, 3  ;;  %v251_v7 = vld [vmem:[%s943_s2 + $0x70] sm:$0xff]  ;;  %v249_v8 = vld [vmem:[%s943_s2 + $0x60] sm:$0xff]  ;;  %v221_v10 = vld [vmem:[%s942_s1 + $0x8] sm:$0xff]  ;;  %s653_s9 = scalar_lea.hbm %s652_s8, 4 }
  0x16   : > { %636 = vset.pattern.permute.xlu2 %v701_v1  ;;  %s219_s13 = scalar_lea.vmem %s941_s0, %s571_s10  ;;  %v227_v11 = vld [vmem:[%s942_s1 + $0x38] sm:$0xff]  ;;  %v233_v12 = vld [vmem:[%s942_s1 + $0x68] sm:$0xff]  ;;  %v245_v14 = vld [vmem:[%s943_s2 + $0x40] sm:$0xff]  ;;  %p654_p11 = scmp.ne.s32.totalorder %s652_s8, %s653_s9 }
  0x17   : > { %v236_v4 = vld [vmem:[%s219_s13] sm:$0xff]  ;;  %310 = vperm.xlu2 %636, %v248_v9   ;;  %v246_v13 = vld [vmem:[%s943_s2 + $0x48] sm:$0xff]  ;;  %v247_v15 = vld [vmem:[%s943_s2 + $0x50] sm:$0xff]  ;;  %p659_p1 = scmp.lt.s32.totalorder %s657_s11, %s653_s9 }
  0x18   : > { %397 = vmatpush.msra.mxu0 %v236_v4  ;;  %592 = vmatpush.msra.mxu2 %v236_v4  ;;  %v222_v16 = vld [vmem:[%s942_s1 + $0x10] sm:$0xff]  ;;  %v228_v17 = vld [vmem:[%s942_s1 + $0x40] sm:$0xff]  ;;  %v242_v20 = vld [vmem:[%s943_s2 + $0x28] sm:$0xff]  ;;  %p655_p12 = pnand %p654_p11, %p770_p5 }
  0x19   : > { %593 = vmatpush.msra.mxu3 %v236_v4  ;;  %572 = vmatmul.msk.f32.vlgmr.msra.gmra.mxu0 %vm333_vm0, %v220_v3  ;;  %v234_v18 = vld [vmem:[%s942_s1 + $0x70] sm:$0xff]  ;;  %v244_v21 = vld [vmem:[%s943_s2 + $0x38] sm:$0xff]  ;;  %v229_v23 = vld [vmem:[%s942_s1 + $0x48] sm:$0xff]  ;;  %p660_p2 = por %p659_p1, %p658_p0 }
  0x1a   : > { %578 = vmatmul.msk.f32.vlgmr.msra.gmra.mxu2 %vm333_vm0, %v226_v5  ;;  %584 = vmatmul.msk.f32.vlgmr.msra.gmra.mxu3 %vm333_vm0, %v232_v6  ;;  %v243_v19 = vld [vmem:[%s943_s2 + $0x30] sm:$0xff]  ;;  %v223_v22 = vld [vmem:[%s942_s1 + $0x18] sm:$0xff]  ;;  %v241_v27 = vld [vmem:[%s943_s2 + $0x20] sm:$0xff]  ;;  %p656_p13 = pneg %p655_p12 }
  0x1b   : > { %v235_v24 = vld [vmem:[%s942_s1 + $0x78] sm:$0xff]  ;;  %v239_v26 = vld [vmem:[%s943_s2 + $0x10] sm:$0xff]  ;;  %v224_v28 = vld [vmem:[%s942_s1 + $0x20] sm:$0xff] }
  0x1c   : > { %v240_v25 = vld [vmem:[%s943_s2 + $0x18] sm:$0xff]  ;;  %v230_v29 = vld [vmem:[%s942_s1 + $0x50] sm:$0xff]  ;;  %v237_v30 = vld [vmem:[%s943_s2] sm:$0xff]  ;;  %p661_p3 = pnand %p660_p2, %p656_p13 }
  0x1d   : > { %325 = vperm.xlu0 %634, %v251_v7   ;;  %315 = vperm.xlu1 %635, %v249_v8   ;;  %v464_v31 = vld [vmem:[%s945_s4] sm:$0xf]  ;;  %v238_v32 = vld [vmem:[%s943_s2 + $0x8] sm:$0xff]  ;;  %v231_v34 = vld [vmem:[%s942_s1 + $0x58] sm:$0xff] }
  0x1e   : > { %v225_v33 = vld [vmem:[%s942_s1 + $0x28] sm:$0xff] }
  0x1f   : > { %305 = vperm.xlu2 %636, %v247_v15  }
  0x21   : > { %573 = vmatmul.msk.f32.gmra.mxu0 %vm333_vm0, %v221_v10 }
  0x22   : > { %579 = vmatmul.msk.f32.gmra.mxu2 %vm333_vm0, %v227_v11  ;;  %585 = vmatmul.msk.f32.gmra.mxu3 %vm333_vm0, %v233_v12 }
  0x25   : > { %300 = vperm.xlu0 %634, %v246_v13   ;;  %295 = vperm.xlu1 %635, %v245_v14  }
  0x27   : > { %290 = vperm.xlu2 %636, %v244_v21  }
  0x29   : > { %574 = vmatmul.msk.f32.gmra.mxu0 %vm333_vm0, %v222_v16 }
  0x2a   : > { %580 = vmatmul.msk.f32.gmra.mxu2 %vm333_vm0, %v228_v17  ;;  %586 = vmatmul.msk.f32.gmra.mxu3 %vm333_vm0, %v234_v18 }
  0x2d   : > { %285 = vperm.xlu0 %634, %v243_v19   ;;  %280 = vperm.xlu1 %635, %v242_v20  }
  0x2f   : > { %275 = vperm.xlu2 %636, %v241_v27  }
  0x31   : > { %575 = vmatmul.msk.f32.gmra.mxu0 %vm333_vm0, %v223_v22 }
  0x32   : > { %581 = vmatmul.msk.f32.gmra.mxu2 %vm333_vm0, %v229_v23  ;;  %587 = vmatmul.msk.f32.gmra.mxu3 %vm333_vm0, %v235_v24 }
  0x35   : > { %270 = vperm.xlu0 %634, %v240_v25   ;;  %265 = vperm.xlu1 %635, %v239_v26  }
  0x37   : > { %260 = vperm.xlu2 %636, %v238_v32  }
  0x39   : > { %576 = vmatmul.msk.f32.gmra.mxu0 %vm333_vm0, %v224_v28 }
  0x3a   : > { %582 = vmatmul.msk.f32.gmra.mxu2 %vm333_vm0, %v230_v29 }
  0x3d   : > { %255 = vperm.xlu0 %634, %v237_v30   ;;  %467 = vperm.xlu1 %635, %v464_v31  }
  0x41   : > { %577 = vmatmul.msk.f32.gmra.mxu0 %vm333_vm0, %v225_v33 }
  0x42   : > { %583 = vmatmul.msk.f32.gmra.mxu2 %vm333_vm0, %v231_v34 }
  0x71   : > { %v311_v43 = vpop.permute.xlu2 %310 }
  0x79   : > { %v306_v53 = vpop.permute.xlu2 %305 }
  0x81   : > { %v291_v0 = vpop.permute.xlu2 %290 }
  0x87   : > { %v331_v38 = vpop.permute.xlu0 %330  ;;  %v321_v42 = vpop.permute.xlu1 %320 }
  0x89   : > { %v276_v11 = vpop.permute.xlu2 %275 }
  0x8f   : > { %v326_v46 = vpop.permute.xlu0 %325  ;;  %v316_v52 = vpop.permute.xlu1 %315 }
  0x91   : > { %v261_v25 = vpop.permute.xlu2 %260 }
  0x96   : > { %v900_v35 = vpop.f32.mrf.mxu0 }
  0x97   : > { %v301_v56 = vpop.permute.xlu0 %300  ;;  %v296_v63 = vpop.permute.xlu1 %295 }
  0x9d   : > { %v417_v36 = vpop.f32.mrf.mxu2  ;;  %v435_v37 = vpop.f32.mrf.mxu3 }
  0x9e   : > { %v902_v39 = vpop.f32.mrf.mxu0  ;;  %v436_v58 = vadd.f32 %v435_v37, %v316_v52 }
  0x9f   : > { %v286_v1 = vpop.permute.xlu0 %285  ;;  %v281_v10 = vpop.permute.xlu1 %280  ;;  %v403_v30 = vadd.f32 %v902_v39, %v261_v25 }
  0xa0   : > { %v459_v62 = vmax.f32 %v436_v58, 0.0  ;;  %v418_v16 = vadd.f32 %v417_v36, %v286_v1  ;;  %v463_v36 = vld [vmem:[%s944_s3] sm:$0xf] }
  0xa1   : > { %v448_v33 = vmax.f32 %v403_v30, 0.0 }
  0xa2   : > { %v453_v20 = vmax.f32 %v418_v16, 0.0 }
  0xa5   : > { %v420_v40 = vpop.f32.mrf.mxu2  ;;  %v438_v41 = vpop.f32.mrf.mxu3 }
  0xa6   : > { %v405_v47 = vpop.f32.mrf.mxu0  ;;  %v439_v54 = vadd.f32 %v438_v41, %v321_v42  ;;  %v421_v12 = vadd.f32 %v420_v40, %v291_v0 }
  0xa7   : > { %v271_v14 = vpop.permute.xlu0 %270  ;;  %v266_v24 = vpop.permute.xlu1 %265 }
  0xa8   : > { %v460_v60 = vmax.f32 %v439_v54, 0.0  ;;  %v454_v18 = vmax.f32 %v421_v12, 0.0  ;;  %v406_v26 = vadd.f32 %v405_v47, %v266_v24 }
  0xaa   : > { %v449_v32 = vmax.f32 %v406_v26, 0.0 }
  0xad   : > { %v423_v44 = vpop.f32.mrf.mxu2  ;;  %v441_v45 = vpop.f32.mrf.mxu3 }
  0xae   : > { %v442_v50 = vadd.f32 %v441_v45, %v326_v46  ;;  %v408_v57 = vpop.f32.mrf.mxu0  ;;  %v424_v8 = vadd.f32 %v423_v44, %v296_v63 }
  0xaf   : > { %v409_v22 = vadd.f32 %v408_v57, %v271_v14  ;;  %v256_v28 = vpop.permute.xlu0 %255 }
  0xb0   : > { %v461_v59 = vmax.f32 %v442_v50, 0.0  ;;  %v455_v17 = vmax.f32 %v424_v8, 0.0  ;;  %v400_v31 = vadd.f32 %v900_v35, %v256_v28  ;;  %v468_v35 = vpop.permute.xlu1 %467 }
  0xb1   : > { %v450_v29 = vmax.f32 %v409_v22, 0.0 }
  0xb2   : > { %v447_v34 = vmax.f32 %v400_v31, 0.0 }
  0xb5   : > { %v426_v48 = vpop.f32.mrf.mxu2  ;;  %v444_v49 = vpop.f32.mrf.mxu3 }
  0xb6   : > { %v445_v51 = vadd.f32 %v444_v49, %v331_v38  ;;  %v411_v2 = vpop.f32.mrf.mxu0  ;;  %v427_v6 = vadd.f32 %v426_v48, %v301_v56 }
  0xb7   : > { %v412_v21 = vadd.f32 %v411_v2, %v276_v11 }
  0xb8   : > { %v462_v55 = vmax.f32 %v445_v51, 0.0  ;;  %v456_v13 = vmax.f32 %v427_v6, 0.0 }
  0xb9   : > { %v451_v27 = vmax.f32 %v412_v21, 0.0 }
  0xba   : > { %470 = vmatpush.msra.mxu1 %v462_v55 }
  0xbc   : > { %471 = vmatpush.msra.mxu1 %v461_v59 }
  0xbd   : > { %v429_v61 = vpop.f32.mrf.mxu2 }
  0xbe   : > { %472 = vmatpush.msra.mxu1 %v460_v60  ;;  %v430_v4 = vadd.f32 %v429_v61, %v306_v53  ;;  %v414_v15 = vpop.f32.mrf.mxu0 }
  0xbf   : > { %v415_v19 = vadd.f32 %v414_v15, %v281_v10 }
  0xc0   : > { %473 = vmatpush.msra.mxu1 %v459_v62  ;;  %v457_v9 = vmax.f32 %v430_v4, 0.0 }
  0xc1   : > { %v452_v23 = vmax.f32 %v415_v19, 0.0 }
  0xc5   : > { %v432_v3 = vpop.f32.mrf.mxu2 }
  0xc6   : > { %v433_v5 = vadd.f32 %v432_v3, %v311_v43 }
  0xc8   : > { %v458_v7 = vmax.f32 %v433_v5, 0.0 }
  0xca   : > { %474 = vmatpush.msra.mxu1 %v458_v7 }
  0xcc   : > { %475 = vmatpush.msra.mxu1 %v457_v9 }
  0xce   : > { %476 = vmatpush.msra.mxu1 %v456_v13 }
  0xd0   : > { %477 = vmatpush.msra.mxu1 %v455_v17 }
  0xd2   : > { %478 = vmatpush.msra.mxu1 %v454_v18 }
  0xd4   : > { %479 = vmatpush.msra.mxu1 %v453_v20 }
  0xd6   : > { %480 = vmatpush.msra.mxu1 %v452_v23 }
  0xd8   : > { %481 = vmatpush.msra.mxu1 %v451_v27 }
  0xda   : > { %482 = vmatpush.msra.mxu1 %v450_v29 }
  0xdc   : > { %483 = vmatpush.msra.mxu1 %v449_v32 }
  0xde   : > { %484 = vmatpush.msra.mxu1 %v448_v33 }
  0xe0   : > { %485 = vmatpush.msra.mxu1 %v447_v34 }
  0xe1   : > { %486 = vmatmul.f32.vlgmr.msra.gmra.mxu1 %v463_v36 }
 0x15e   : > { %v487_v37 = vpop.f32.mrf.mxu1 }
 0x15f   : > { %v488_v38 = vadd.f32 %v487_v37, %v468_v35 }
 0x161   : > { %490 = vst [vmem:[%s215_s26] sm:$0xf] %v488_v38 }
 0x162   : > { %664 = shalt.err (!%p661_p3)
}
 0x163   : > { %594 = dma.vmem_to_hbm [thread:$0]  (%p770_p5), %s505_s30, 64, %s507_s6, %s492_s7  }
 0x164 PF: > { %p600_p4 = scmp.ge.s32.totalorder %s699_s21, 2  ;;  %s518_s14 = sand.u32 1, %s687_s18  }
 0x165   : > { %s519_s15 = scalar_lea.sflag [#allocation3], %s518_s14 }
 0x166   : > { %p597_p7 = pnand %p600_p4, %p774_p6 }
 0x168   : > { %p598_p8 = pneg %p597_p7 }
 0x16a   : > { %682 = dma.done.wait (%p598_p8), %s519_s15, 64  }
 0x16b   : > { %684 = vsyncadd (%p598_p8), %s519_s15, 4294967232  ;;  %p15_p9 = scmp.ge.s32.totalorder %s757_s24, 4   ;;  %s949_s18 = smov %s691_s19 }
 0x16c   : > { %s950_s19 = smov %s695_s20  ;;  %s951_s20 = smov %s768_s27 }
 0x16d   : > { %s952_s21 = smov %s757_s24  ;;  %17 = sbr.rel (!%p15_p9) target bundleno = 3 (0x3), region = 75 }
 0x172   :  { %525 = vsyncpa [#allocation3], 1 }
 0x173   :  { %527 = vsyncpa [#allocation3 + $0x1], 1 }

</bundles_post_ra>
